<compile_context>
chip_gen: v7x
topology: tpu7x:2x2x1
jax: 0.10.0
libtpu: 0.0.40
codegen_flags: <defaults>
</compile_context>

<pallas_src>
import jax
import jax.numpy as jnp
from jax import lax
from jax.experimental import pallas as pl
from jax.experimental.pallas import tpu as pltpu


def _qkv_kernel(x_ref, w_ref, b_ref, o_ref):
    # x_ref: (C, T)   channel-major activation tile (lane-dense over spatial)
    # w_ref: (C, 3C)  resident weight (= torch weight.T), fetched once
    # b_ref: (1, 3C)  bias, already f32
    # o_ref: (T, 3C)  output row block of the (N, HW, 3C) result
    #
    # Contract the C axis of both operands directly; no per-step .T relayout.
    acc = lax.dot_general(
        x_ref[...], w_ref[...],
        dimension_numbers=(((0,), (0,)), ((), ())),
        preferred_element_type=jnp.float32)
    o_ref[...] = (acc + b_ref[...]).astype(o_ref.dtype)


def _round_up(v, m):
    return -(-v // m) * m


def _sublane(itemsize):
    # sublane packing granule: 8 rows for 4-byte, 16 for 2-byte, 32 for 1-byte
    return max(8, 32 // max(itemsize, 1))


def _pick_hw_tile(hw, c, in_itemsize, out_itemsize, budget_bytes, n_images):
    """Largest spatial tile (multiple of 128, or the full extent when hw < 128)
    whose *padded*, double-buffered VMEM footprint fits the budget.  Prefers
    exact divisors of hw; keeps >= 2 blocks in the (fully parallel) grid."""
    c3 = 3 * c
    # Padded VMEM sizes (lane = 128, sublane = 8/16/32 granules).
    c_pad = _round_up(c, _sublane(in_itemsize))        # x / weight sublane dim
    c3_pad = _round_up(c3, 128)                        # weight / bias / out lanes
    per_t = 2 * c_pad * in_itemsize + 2 * c3_pad * out_itemsize  # dbl-buf x + out
    fixed = 2 * c_pad * c3_pad * in_itemsize + 2 * 8 * c3_pad * 4  # weight + bias
    cap = (budget_bytes - fixed) // max(per_t, 1)

    if hw < 128:
        return hw                                      # full-extent block is legal

    max_t = min(cap, hw, 4096)
    max_t = (max_t // 128) * 128
    if max_t < 128:
        max_t = 128                                    # floor (budget too small)
    # Prefer an exact divisor of hw (no partial boundary block).
    t_hw = None
    for t in range(max_t, 0, -128):
        if hw % t == 0:
            t_hw = t
            break
    if t_hw is None:
        t_hw = max_t                                   # partial last block is masked
    # Never collapse below 2 parallel blocks (keeps both v7x TensorCores busy).
    while n_images * pl.cdiv(hw, t_hw) < 2 and t_hw % 256 == 0:
        t_hw //= 2
    return t_hw


def _default_vmem_budget():
    try:
        cap = pltpu.get_tpu_info().vmem_capacity_bytes
    except Exception:
        cap = 64 << 20
    # ~3/8 of physical VMEM: 48 MiB on v5e/v6e (128 MiB), 24 MiB on v7x (64 MiB).
    return min((cap * 3) // 8, 48 << 20)


def getfeature_forward(x, weight, bias, *, compute_dtype=jnp.bfloat16,
                       out_dtype=None, vmem_budget_bytes=None):
    """x: (N, C, H, W); weight: (3C, C) (PyTorch nn.Linear layout); bias: (3C,).

    Returns qkv of shape (N*H*W, 3C), matching
      x.permute(1,0,2,3).reshape(C,-1).permute(1,0) @ weight.T + bias.
    """
    N, C, H, W = x.shape
    HW = H * W
    M = N * HW
    C3 = 3 * C
    if out_dtype is None:
        out_dtype = x.dtype
    if vmem_budget_bytes is None:
        vmem_budget_bytes = _default_vmem_budget()

    # Free, contiguous reshape: NCHW -> (N, C, H*W); no HBM transpose.
    x3 = x.reshape(N, C, HW)
    w_t = weight.T                                     # (C, 3C): tiny one-time prep
    b2 = bias.reshape(1, C3).astype(jnp.float32)       # bias cast hoisted from kernel

    if compute_dtype is not None:                      # bf16 halves HBM reads + VMEM
        x3 = x3.astype(compute_dtype)
        w_t = w_t.astype(compute_dtype)

    in_itemsize = jnp.dtype(x3.dtype).itemsize
    out_itemsize = jnp.dtype(out_dtype).itemsize
    t_hw = _pick_hw_tile(HW, C, in_itemsize, out_itemsize, vmem_budget_bytes, N)
    n_hw_blocks = pl.cdiv(HW, t_hw)
    grid = (N, n_hw_blocks)

    cost = pl.CostEstimate(
        flops=2 * M * C * C3 + M * C3,
        transcendentals=0,
        bytes_accessed=(x3.size * in_itemsize
                        + w_t.size * jnp.dtype(w_t.dtype).itemsize
                        + b2.size * 4
                        + M * C3 * out_itemsize),
    )

    out3 = pl.pallas_call(
        _qkv_kernel,
        # (N, HW, 3C): every grid step writes one full (t_hw, 3C) row block; the
        # final (M, 3C) view is a free contiguous reshape in the wrapper.
        out_shape=jax.ShapeDtypeStruct((N, HW, C3), out_dtype),
        grid_spec=pltpu.PrefetchScalarGridSpec(
            num_scalar_prefetch=0,
            grid=grid,
            in_specs=[
                # (C, t_hw) channel-major activation tile; batch dim squeezed.
                pl.BlockSpec((None, C, t_hw), lambda n, j: (n, 0, j)),
                # Resident weight / bias (constant index -> fetched once).
                pl.BlockSpec((C, C3), lambda n, j: (0, 0)),
                pl.BlockSpec((1, C3), lambda n, j: (0, 0)),
            ],
            out_specs=pl.BlockSpec((None, t_hw, C3), lambda n, j: (n, j, 0)),
        ),
        compiler_params=pltpu.CompilerParams(
            # Fully independent output blocks: both grid axes are parallel.
            dimension_semantics=("parallel", "parallel"),
            # Keep the compiler's scoped VMEM limit in sync with the tile budget.
            vmem_limit_bytes=int(max(32 << 20, vmem_budget_bytes + (8 << 20))),
        ),
        cost_estimate=cost,
    )(x3, w_t, b2)

    return out3.reshape(M, C3)


if __name__ == "__main__":
    # Small shapes consistent with the forward: N=2, C=dim=4, H=W=16 -> M=512
    N, C, H, W = 2, 4, 16, 16
    key = jax.random.PRNGKey(0)
    kx, kw, kb = jax.random.split(key, 3)

    x = jax.random.normal(kx, (N, C, H, W), dtype=jnp.float32)
    # Deterministic nn.Linear(dim, 3*dim, bias=True) parameters (PyTorch layout)
    weight = jax.random.normal(kw, (3 * C, C), dtype=jnp.float32) * 0.1  # (out, in)
    bias = jax.random.normal(kb, (3 * C,), dtype=jnp.float32) * 0.1

    # Reference (plain JAX) of the exact PyTorch semantics.
    xm_ref = jnp.transpose(x, (1, 0, 2, 3)).reshape(C, -1).T
    ref = xm_ref @ weight.T + bias

    # Default path: bf16 activations/weights, f32 accumulate, f32 output.
    out_bf16 = jax.block_until_ready(getfeature_forward(x, weight, bias))
    # Full-precision path (f32 end to end) for a tight semantic check.
    out_f32 = jax.block_until_ready(
        getfeature_forward(x, weight, bias, compute_dtype=None))

    assert out_bf16.shape == (N * H * W, 3 * C)
    assert out_f32.shape == (N * H * W, 3 * C)
    assert jnp.allclose(out_f32, ref, atol=1e-5, rtol=1e-5)
    # Mixed-precision path: loosened tolerance (bf16 inputs, f32 accumulate).
    assert jnp.allclose(out_bf16, ref, atol=5e-2, rtol=5e-2)

    print("KERNEL_OK")
</pallas_src>

<mosaic_0001>
module attributes {stable_mosaic.version = 11 : i64} {
  func.func @_qkv_kernel(%arg0: i32, %arg1: i32, %arg2: memref<1x4x256xbf16, #tpu.memory_space<vmem>>, %arg3: memref<4x12xbf16, #tpu.memory_space<vmem>>, %arg4: memref<1x12xf32, #tpu.memory_space<vmem>>, %arg5: memref<1x256x12xf32, #tpu.memory_space<vmem>>) attributes {dimension_semantics = [#tpu.dimension_semantics<parallel>, #tpu.dimension_semantics<parallel>], iteration_bounds = array<i64: 2, 1>, scalar_prefetch = 0 : i64, scratch_operands = 0 : i64, tpu.core_type = #tpu.core_type<tc>, window_params = [{transform_indices = @transform_0, window_bounds = array<i64: 1, 4, 256>}, {pipeline_mode = #tpu.pipeline_mode<synchronous>, transform_indices = @transform_1, window_bounds = array<i64: 4, 12>}, {pipeline_mode = #tpu.pipeline_mode<synchronous>, transform_indices = @transform_2, window_bounds = array<i64: 1, 12>}, {transform_indices = @transform_3, window_bounds = array<i64: 1, 256, 12>}]} {
    %c0 = arith.constant 0 : index
    %c0_0 = arith.constant 0 : index
    %c0_1 = arith.constant 0 : index
    %0 = vector.load %arg2[%c0, %c0_0, %c0_1] : memref<1x4x256xbf16, #tpu.memory_space<vmem>>, vector<1x4x256xbf16>
    %1 = vector.shape_cast %0 : vector<1x4x256xbf16> to vector<4x256xbf16>
    %c0_2 = arith.constant 0 : index
    %c0_3 = arith.constant 0 : index
    %2 = vector.load %arg3[%c0_2, %c0_3] : memref<4x12xbf16, #tpu.memory_space<vmem>>, vector<4x12xbf16>
    %cst = arith.constant dense<0.000000e+00> : vector<256x12xf32>
    %3 = tpu.matmul %1, %2, %cst {dimension_numbers = #tpu.dot_dimension_numbers<[0], [0], [1], [1], [0, 1, 1, 1], [], []>} : vector<4x256xbf16>, vector<4x12xbf16>, vector<256x12xf32> -> vector<256x12xf32>
    %c0_4 = arith.constant 0 : index
    %c0_5 = arith.constant 0 : index
    %4 = vector.load %arg4[%c0_4, %c0_5] : memref<1x12xf32, #tpu.memory_space<vmem>>, vector<1x12xf32>
    %5 = vector.broadcast %4 : vector<1x12xf32> to vector<256x12xf32>
    %6 = arith.addf %3, %5 : vector<256x12xf32>
    %c0_6 = arith.constant 0 : index
    %c0_7 = arith.constant 0 : index
    %c0_8 = arith.constant 0 : index
    %7 = vector.load %arg5[%c0_6, %c0_7, %c0_8] : memref<1x256x12xf32, #tpu.memory_space<vmem>>, vector<1x256x12xf32>
    %8 = vector.shape_cast %7 : vector<1x256x12xf32> to vector<256x12xf32>
    %9 = vector.shape_cast %6 : vector<256x12xf32> to vector<1x256x12xf32>
    tpu.vector_store %arg5[%c0_6, %c0_7, %c0_8], %9 {strides = array<i32>} : memref<1x256x12xf32, #tpu.memory_space<vmem>>, vector<1x256x12xf32>,
    return
  }
  func.func @transform_0(%arg0: i32, %arg1: i32) -> (i32, i32, i32) {
    %c0_i32 = arith.constant 0 : i32
    %c0_i32_0 = arith.constant 0 : i32
    return %arg0, %c0_i32, %arg1 : i32, i32, i32
  }
  func.func @transform_1(%arg0: i32, %arg1: i32) -> (i32, i32) {
    %c0_i32 = arith.constant 0 : i32
    %c0_i32_0 = arith.constant 0 : i32
    %c0_i32_1 = arith.constant 0 : i32
    return %c0_i32, %c0_i32_0 : i32, i32
  }
  func.func @transform_2(%arg0: i32, %arg1: i32) -> (i32, i32) {
    %c0_i32 = arith.constant 0 : i32
    %c0_i32_0 = arith.constant 0 : i32
    %c0_i32_1 = arith.constant 0 : i32
    return %c0_i32, %c0_i32_0 : i32, i32
  }
  func.func @transform_3(%arg0: i32, %arg1: i32) -> (i32, i32, i32) {
    %c0_i32 = arith.constant 0 : i32
    %c0_i32_0 = arith.constant 0 : i32
    return %arg0, %arg1, %c0_i32 : i32, i32, i32
  }
}

</mosaic_0001>

<bundles_post_ra>
// kernel: tpu_custom_call.1
= control target key start
LH: loop header
LB: loop body
LE: loop exit
PB: predicated region body
PF: predicated region fallthrough
CT: control target
= control target key end

     0   :  { %8 = vsyncpa [#allocation3], 0  ;;  %s1106_s0 = inlined_call_operand.hbm [shape: bf16[2,4,256], index: 0, kind: input, shape index: {}]   ;;  %s1107_s1 = inlined_call_operand.vmem [shape: bf16[4,12], index: 1, kind: input, shape index: {}]   ;;  %s1108_s2 = inlined_call_operand.vmem [shape: f32[1,12], index: 2, kind: input, shape index: {}]   ;;  %s1109_s3 = inlined_call_operand.vmem [shape: f32[2,256,12], index: 3, kind: output, shape index: {}]  }
   0x1   :  { %10 = vsyncpa [#allocation3 + $0x1], 0  ;;  %s859_s12 = smov 0   ;;  %s861_s13 = smov 0  }
   0x2   :  { %s863_s14 = smov 0   ;;  %s865_s15 = smov 0  }
   0x3   :  { %s867_s16 = smov 0   ;;  %s869_s17 = smov 0  }
   0x4 LB: > { %s612_s18 = sadd.s32 4294967295, %s836_s17   ;;  %s28_s19 = sadd.s32 1, %s832_s16  ;;  %s836_s17 = sphi %s869_s17, %s16_s17   ;;  %s832_s16 = sphi %s867_s16, %s1119_s16   ;;  %s828_s15 = sphi %s865_s15, %s1118_s15   ;;  %s824_s14 = sphi %s863_s14, %s1117_s14   ;;  %s820_s13 = sphi %s861_s13, %s1116_s13   ;;  %s816_s12 = sphi %s859_s12, %s1115_s12  }
   0x5   : > { %p30_p0 = scmp.ge.s32.totalorder %s28_s19, 2  ;;  %s37_s20 = sadd.s32 1, %s824_s14 }
   0x6   : > { %p44_p1 = scmp.ne.s32.totalorder %s824_s14, %s820_s13  ;;  %p45_p2 = scmp.eq.s32.totalorder %s836_s17, 0 }
   0x7   : > { %s1121_s19 = smov (%p30_p0, %s28_s19), 0  ;;  %p50_p4 = scmp.ne.s32.totalorder %s820_s13, %s816_s12 }
   0x8   : > { %p895_p3 = por %p45_p2, %p44_p1  ;;  %s32_s22 = ssub.s32 %s832_s16, %s1121_s19 }
   0x9   : > { %p51_p5 = scmp.eq.s32.totalorder %s612_s18, 0  ;;  %p35_p6 = scmp.eq.s32.totalorder %s32_s22, 0 }
   0xa   : > { %p706_p8 = scmp.lt.s32.totalorder %s836_s17, 2  ;;  %s150_s25 = sand.u32 1, %s824_s14  }
   0xb   : > { %p902_p7 = por %p51_p5, %p50_p4  ;;  %s643_s26 = sshll.u32 %s832_s16, 6 }
   0xc   : > { %s908_s24 = scalar_select %p35_p6, %s824_s14, %s37_s20  }
   0xd   : > { %s616_s27 = sshll.u32 %s150_s25, 2  ;;  %s915_s30 = scalar_lea.hbm %s1106_s0, %s643_s26 }
   0xe   : > { %s154_s4 = scalar_lea.vmem [#allocation2], %s616_s27  ;;  %p919_p9 = pnand %p706_p8, %p895_p3 }
   0xf   : > { %s164_s5 = sshll.u32 %s154_s4, 4  ;;  %s151_s7 = scalar_lea.sflag [#allocation3], %s150_s25  ;;  %s923_s5 = int_to_ptr.vmem [resolvable:$true] %s164_s5 }
  0x10   : > { %s756_s8 = scalar_lea.hbm %s915_s30, 64  ;;  %p758_p13 = pneg %p919_p9 }
  0x11   : > { %p757_p12 = scmp.ne.s32.totalorder %s915_s30, %s756_s8  ;;  %s761_s11 = scalar_lea.hbm %s1106_s0, 128 }
  0x12   : > { %p762_p2 = scmp.lt.u32.totalorder %s915_s30, %s1106_s0  ;;  %p763_p3 = scmp.lt.u32.totalorder %s761_s11, %s756_s8 }
  0x13   : > { %p759_p0 = pnand %p758_p13, %p757_p12  ;;  %p765_p5 = scmp.lt.u32.totalorder %s756_s8, %s915_s30 }
  0x14   : > { %p764_p4 = por %p763_p3, %p762_p2 }
  0x15   : > { %p760_p1 = pneg %p759_p0 }
  0x16   : > { %p766_p6 = por %p765_p5, %p764_p4 }
  0x18   : > { %p767_p8 = pnand %p766_p6, %p760_p1 }
  0x1a   : > { %770 = shalt.err (!%p767_p8)
}
  0x1b   : > { %s771_s20 = scalar_lea.vmem %s923_s5, 64  ;;  %s838_s21 = smov [#allocation2]  }
  0x1c   : > { %p772_p12 = scmp.ne.s32.totalorder %s923_s5, %s771_s20  ;;  %s776_s22 = sshll.u32 %s838_s21, 4  ;;  %s777_s22 = int_to_ptr.vmem [resolvable:$false] %s776_s22 }
  0x1d   : > { %s778_s25 = scalar_lea.vmem %s777_s22, 128  ;;  %p779_p11 = scmp.lt.s32.totalorder %s923_s5, %s777_s22 }
  0x1e   : > { %p774_p0 = pnand %p772_p12, %p758_p13  ;;  %p780_p2 = scmp.lt.s32.totalorder %s778_s25, %s771_s20 }
  0x20   : > { %p775_p10 = pneg %p774_p0  ;;  %p781_p3 = por %p780_p2, %p779_p11 }
  0x22   : > { %p782_p4 = pnand %p781_p3, %p775_p10 }
  0x24   : > { %785 = shalt.err (!%p782_p4)
}
  0x25   : > { %705 = dma.hbm_to_vmem [thread:$0]  (!%p919_p9), %s915_s30, 64, %s923_s5, %s151_s7  }
  0x26   : > { %p1113_p1 = scmp.lt.s32.totalorder %s836_s17, 3  ;;  %p1114_p5 = scmp.ge.s32.totalorder %s836_s17, 1 }
  0x28   : > { %p170_p13 = pnand %p1114_p5, %p1113_p1 }
  0x29   : > { %s175_s26 = sand.u32 (!%p170_p13), 1, %s820_s13  }
  0x2a   : > { %173 = sbr.rel (%p170_p13) target bundleno = 432 (0x1b0), region = 32  ;;  %s620_s27 = sshll.u32 (!%p170_p13), %s175_s26, 2 }
  0x2b   : > { %s176_s28 = scalar_lea.sflag (!%p170_p13), [#allocation3], %s175_s26  ;;  %s179_s29 = scalar_lea.vmem (!%p170_p13), [#allocation2], %s620_s27 }
  0x31   : > { %811 = dma.done.wait (%p902_p7), %s176_s28, 64  }
  0x32   : > { %813 = vsyncadd (%p902_p7), %s176_s28, 4294967232  ;;  %vm319_vm0 = vcmask 1041408   ;;  %v624_v0 = vld.sshfl [vmem:[%s179_s29] sm:$0x33 pattern:$0x76325410] }
  0x33   : > { %v219_v1 = vld [vmem:[%s1107_s1] sm:$0x3]  ;;  %238 = vxpose.xlu0.c.b16.start.end [1/1] (short) %v624_v0, 128  ;;  %v235_v3 = vcombine.high %v624_v0, %v624_v0  ;;  %vm270_vm1 = vcmask 31744   ;;  %p208_p7 = scmp.lt.s32.totalorder %s828_s15, 1  ;;  %vm484_vm2 = vcmask 97280  }
  0x34   : > { %698 = vmatprep.subr.msk.bf16.mxu0 %vm319_vm0, %v219_v1  ;;  %v321_v2 = vsel %vm319_vm0, %v219_v1, 0  ;;  %699 = vmatprep.subr.msk.bf16.mxu1 %vm319_vm0, %v219_v1  ;;  %v985_v20 = vld [vmem:[%s1108_s2] ss:$0 sm:$0xff] }
  0x35   : > { %663 = vmatpush3.bf16.msra.mxu0 %v321_v2  ;;  %697 = vmatpush3.bf16.msra.mxu1 %v321_v2  ;;  %s1123_s15 = smov (!%p208_p7, %s828_s15), 1 }
  0x36   : > { %s644_s23 = sshll.u32 %s1123_s15, 8 }
  0x37   : > { %s990_s9 = scalar_lea.vmem %s1109_s3, %s644_s23 }
  0x50   : > { %254 = vxpose.xlu0.c.b16.start.end [1/1] (short) %v235_v3, 128 }
  0x99   : > { %v246_v4 = vpop.trf.xlu0 }
  0x9a   : > { %664 = vmatprep.mubr.msk.bf16.mxu0 %vm270_vm1, %v246_v4 }
  0x9d   : > { %v247_v5 = vpop.trf.xlu0 }
  0x9e   : > { %665 = vmatmul.mubr.msk.bf16.vlgmr.msra.gmra.mrb[0].mxu0 %vm270_vm1, %v247_v5 }
  0xa1   : > { %v248_v6 = vpop.trf.xlu0 }
  0xa2   : > { %668 = vmatprep.mubr.msk.bf16.mxu0 %vm270_vm1, %v248_v6 }
  0xa5   : > { %v249_v7 = vpop.trf.xlu0 }
  0xa6   : > { %669 = vmatmul.mubr.msk.bf16.gmra.mrb[4].mxu0 %vm270_vm1, %v249_v7 }
  0xa9   : > { %v250_v8 = vpop.trf.xlu0 }
  0xaa   : > { %672 = vmatprep.mubr.msk.bf16.mxu0 %vm270_vm1, %v250_v8 }
  0xad   : > { %v251_v9 = vpop.trf.xlu0 }
  0xae   : > { %673 = vmatmul.mubr.msk.bf16.gmra.mrb[8].mxu0 %vm270_vm1, %v251_v9 }
  0xb1   : > { %v252_v10 = vpop.trf.xlu0 }
  0xb2   : > { %676 = vmatprep.mubr.msk.bf16.mxu0 %vm270_vm1, %v252_v10 }
  0xb5   : > { %v253_v11 = vpop.trf.xlu0 }
  0xb6   : > { %677 = vmatmul.mubr.msk.bf16.gmra.mrb[12].mxu0 %vm270_vm1, %v253_v11 }
  0xb9   : > { %v262_v12 = vpop.trf.xlu0 }
  0xba   : > { %680 = vmatprep.mubr.msk.bf16.mxu1 %vm270_vm1, %v262_v12 }
  0xbd   : > { %v263_v13 = vpop.trf.xlu0 }
  0xbe   : > { %681 = vmatmul.mubr.msk.bf16.vlgmr.msra.gmra.mrb[0].mxu1 %vm270_vm1, %v263_v13 }
  0xc1   : > { %v264_v14 = vpop.trf.xlu0 }
  0xc2   : > { %684 = vmatprep.mubr.msk.bf16.mxu1 %vm270_vm1, %v264_v14 }
  0xc5   : > { %v265_v15 = vpop.trf.xlu0 }
  0xc6   : > { %685 = vmatmul.mubr.msk.bf16.gmra.mrb[4].mxu1 %vm270_vm1, %v265_v15 }
  0xc9   : > { %v266_v16 = vpop.trf.xlu0 }
  0xca   : > { %688 = vmatprep.mubr.msk.bf16.mxu1 %vm270_vm1, %v266_v16 }
  0xcd   : > { %v267_v17 = vpop.trf.xlu0 }
  0xce   : > { %689 = vmatmul.mubr.msk.bf16.gmra.mrb[8].mxu1 %vm270_vm1, %v267_v17 }
  0xd1   : > { %v268_v18 = vpop.trf.xlu0 }
  0xd2   : > { %692 = vmatprep.mubr.msk.bf16.mxu1 %vm270_vm1, %v268_v18 }
  0xd5   : > { %v269_v19 = vpop.trf.xlu0 }
  0xd6   : > { %693 = vmatmul.mubr.msk.bf16.gmra.mrb[12].mxu1 %vm270_vm1, %v269_v19 }
 0x171   : > { %v666_v21 = vpop.f32.mrb[0].mxu0 }
 0x172   : > { %v366_v22 = vadd.f32 %v666_v21, %v985_v20  ;;  %v357_v23 = vpop.f32.mrb[1].mxu0 }
 0x173   : > { %v358_v24 = vadd.f32 %v985_v20, %v357_v23  ;;  %v667_v25 = vpop.f32.mrb[2].mxu0 }
 0x174   : > { %487 = vst.msk [vmem:[%s990_s9 + $0x10] sm:$0xff] %vm484_vm2, %v366_v22  ;;  %v369_v26 = vadd.f32 %v667_v25, %v985_v20  ;;  %v360_v27 = vpop.f32.mrb[3].mxu0 }
 0x175   : > { %485 = vst.msk [vmem:[%s990_s9] sm:$0xff] %vm484_vm2, %v358_v24  ;;  %v361_v28 = vadd.f32 %v985_v20, %v360_v27 }
 0x176   : > { %488 = vst.msk [vmem:[%s990_s9 + $0x18] sm:$0xff] %vm484_vm2, %v369_v26 }
 0x177   : > { %486 = vst.msk [vmem:[%s990_s9 + $0x8] sm:$0xff] %vm484_vm2, %v361_v28 }
 0x179   : > { %v670_v29 = vpop.f32.mrb[4].mxu0 }
 0x17a   : > { %v382_v30 = vadd.f32 %v670_v29, %v985_v20  ;;  %v373_v31 = vpop.f32.mrb[5].mxu0 }
 0x17b   : > { %v374_v32 = vadd.f32 %v985_v20, %v373_v31  ;;  %v671_v33 = vpop.f32.mrb[6].mxu0 }
 0x17c   : > { %491 = vst.msk [vmem:[%s990_s9 + $0x30] sm:$0xff] %vm484_vm2, %v382_v30  ;;  %v385_v34 = vadd.f32 %v671_v33, %v985_v20  ;;  %v376_v35 = vpop.f32.mrb[7].mxu0 }
 0x17d   : > { %489 = vst.msk [vmem:[%s990_s9 + $0x20] sm:$0xff] %vm484_vm2, %v374_v32  ;;  %v377_v36 = vadd.f32 %v985_v20, %v376_v35 }
 0x17e   : > { %492 = vst.msk [vmem:[%s990_s9 + $0x38] sm:$0xff] %vm484_vm2, %v385_v34 }
 0x17f   : > { %490 = vst.msk [vmem:[%s990_s9 + $0x28] sm:$0xff] %vm484_vm2, %v377_v36 }
 0x181   : > { %v674_v37 = vpop.f32.mrb[8].mxu0 }
 0x182   : > { %v398_v38 = vadd.f32 %v674_v37, %v985_v20  ;;  %v389_v39 = vpop.f32.mrb[9].mxu0 }
 0x183   : > { %v390_v40 = vadd.f32 %v985_v20, %v389_v39  ;;  %v675_v41 = vpop.f32.mrb[10].mxu0 }
 0x184   : > { %495 = vst.msk [vmem:[%s990_s9 + $0x50] sm:$0xff] %vm484_vm2, %v398_v38  ;;  %v401_v42 = vadd.f32 %v675_v41, %v985_v20  ;;  %v392_v43 = vpop.f32.mrb[11].mxu0 }
 0x185   : > { %493 = vst.msk [vmem:[%s990_s9 + $0x40] sm:$0xff] %vm484_vm2, %v390_v40  ;;  %v393_v44 = vadd.f32 %v985_v20, %v392_v43 }
 0x186   : > { %496 = vst.msk [vmem:[%s990_s9 + $0x58] sm:$0xff] %vm484_vm2, %v401_v42 }
 0x187   : > { %494 = vst.msk [vmem:[%s990_s9 + $0x48] sm:$0xff] %vm484_vm2, %v393_v44 }
 0x189   : > { %v678_v45 = vpop.f32.mrb[12].mxu0 }
 0x18a   : > { %v414_v46 = vadd.f32 %v678_v45, %v985_v20  ;;  %v405_v47 = vpop.f32.mrb[13].mxu0 }
 0x18b   : > { %v406_v48 = vadd.f32 %v985_v20, %v405_v47  ;;  %v679_v49 = vpop.f32.mrb[14].mxu0 }
 0x18c   : > { %499 = vst.msk [vmem:[%s990_s9 + $0x70] sm:$0xff] %vm484_vm2, %v414_v46  ;;  %v417_v50 = vadd.f32 %v679_v49, %v985_v20  ;;  %v408_v51 = vpop.f32.mrb[15].mxu0 }
 0x18d   : > { %497 = vst.msk [vmem:[%s990_s9 + $0x60] sm:$0xff] %vm484_vm2, %v406_v48  ;;  %v409_v52 = vadd.f32 %v985_v20, %v408_v51 }
 0x18e   : > { %500 = vst.msk [vmem:[%s990_s9 + $0x78] sm:$0xff] %vm484_vm2, %v417_v50 }
 0x18f   : > { %498 = vst.msk [vmem:[%s990_s9 + $0x68] sm:$0xff] %vm484_vm2, %v409_v52 }
 0x191   : > { %v682_v53 = vpop.f32.mrb[0].mxu1 }
 0x192   : > { %v430_v54 = vadd.f32 %v682_v53, %v985_v20  ;;  %v421_v55 = vpop.f32.mrb[1].mxu1 }
 0x193   : > { %v422_v56 = vadd.f32 %v985_v20, %v421_v55  ;;  %v683_v57 = vpop.f32.mrb[2].mxu1 }
 0x194   : > { %503 = vst.msk [vmem:[%s990_s9 + $0x90] sm:$0xff] %vm484_vm2, %v430_v54  ;;  %v433_v58 = vadd.f32 %v683_v57, %v985_v20  ;;  %v424_v59 = vpop.f32.mrb[3].mxu1 }
 0x195   : > { %501 = vst.msk [vmem:[%s990_s9 + $0x80] sm:$0xff] %vm484_vm2, %v422_v56  ;;  %v425_v60 = vadd.f32 %v985_v20, %v424_v59 }
 0x196   : > { %504 = vst.msk [vmem:[%s990_s9 + $0x98] sm:$0xff] %vm484_vm2, %v433_v58 }
 0x197   : > { %502 = vst.msk [vmem:[%s990_s9 + $0x88] sm:$0xff] %vm484_vm2, %v425_v60 }
 0x199   : > { %v686_v61 = vpop.f32.mrb[4].mxu1 }
 0x19a   : > { %v446_v62 = vadd.f32 %v686_v61, %v985_v20  ;;  %v437_v63 = vpop.f32.mrb[5].mxu1 }
 0x19b   : > { %v438_v0 = vadd.f32 %v985_v20, %v437_v63  ;;  %v687_v1 = vpop.f32.mrb[6].mxu1 }
 0x19c   : > { %507 = vst.msk [vmem:[%s990_s9 + $0xb0] sm:$0xff] %vm484_vm2, %v446_v62  ;;  %v449_v2 = vadd.f32 %v687_v1, %v985_v20  ;;  %v440_v3 = vpop.f32.mrb[7].mxu1 }
 0x19d   : > { %505 = vst.msk [vmem:[%s990_s9 + $0xa0] sm:$0xff] %vm484_vm2, %v438_v0  ;;  %v441_v4 = vadd.f32 %v985_v20, %v440_v3 }
 0x19e   : > { %508 = vst.msk [vmem:[%s990_s9 + $0xb8] sm:$0xff] %vm484_vm2, %v449_v2 }
 0x19f   : > { %506 = vst.msk [vmem:[%s990_s9 + $0xa8] sm:$0xff] %vm484_vm2, %v441_v4 }
 0x1a1   : > { %v690_v5 = vpop.f32.mrb[8].mxu1 }
 0x1a2   : > { %v462_v6 = vadd.f32 %v690_v5, %v985_v20  ;;  %v453_v7 = vpop.f32.mrb[9].mxu1 }
 0x1a3   : > { %v454_v8 = vadd.f32 %v985_v20, %v453_v7  ;;  %v691_v9 = vpop.f32.mrb[10].mxu1 }
 0x1a4   : > { %511 = vst.msk [vmem:[%s990_s9 + $0xd0] sm:$0xff] %vm484_vm2, %v462_v6  ;;  %v465_v10 = vadd.f32 %v691_v9, %v985_v20  ;;  %v456_v11 = vpop.f32.mrb[11].mxu1 }
 0x1a5   : > { %509 = vst.msk [vmem:[%s990_s9 + $0xc0] sm:$0xff] %vm484_vm2, %v454_v8  ;;  %v457_v12 = vadd.f32 %v985_v20, %v456_v11 }
 0x1a6   : > { %512 = vst.msk [vmem:[%s990_s9 + $0xd8] sm:$0xff] %vm484_vm2, %v465_v10 }
 0x1a7   : > { %510 = vst.msk [vmem:[%s990_s9 + $0xc8] sm:$0xff] %vm484_vm2, %v457_v12 }
 0x1a9   : > { %v694_v13 = vpop.f32.mrb[12].mxu1 }
 0x1aa   : > { %v478_v14 = vadd.f32 %v694_v13, %v985_v20  ;;  %v469_v15 = vpop.f32.mrb[13].mxu1 }
 0x1ab   : > { %v470_v16 = vadd.f32 %v985_v20, %v469_v15  ;;  %v695_v17 = vpop.f32.mrb[14].mxu1 }
 0x1ac   : > { %515 = vst.msk [vmem:[%s990_s9 + $0xf0] sm:$0xff] %vm484_vm2, %v478_v14  ;;  %v481_v18 = vadd.f32 %v695_v17, %v985_v20  ;;  %v472_v19 = vpop.f32.mrb[15].mxu1 }
 0x1ad   : > { %513 = vst.msk [vmem:[%s990_s9 + $0xe0] sm:$0xff] %vm484_vm2, %v470_v16  ;;  %v473_v21 = vadd.f32 %v985_v20, %v472_v19 }
 0x1ae   : > { %516 = vst.msk [vmem:[%s990_s9 + $0xf8] sm:$0xff] %vm484_vm2, %v481_v18 }
 0x1af   : > { %514 = vst.msk [vmem:[%s990_s9 + $0xe8] sm:$0xff] %vm484_vm2, %v473_v21 }
 0x1b0 PF: > { %s16_s17 = sadd.s32 1, %s836_s17   ;;  %s1115_s12 = smov %s820_s13 }
 0x1b1   : > { %p13_p9 = scmp.ge.s32.totalorder %s16_s17, 4   ;;  %s1116_s13 = smov %s824_s14 }
 0x1b2   : > { %s1117_s14 = smov %s908_s24  ;;  %s1118_s15 = smov %s832_s16 }
 0x1b3   : > { %s1119_s16 = smov %s1121_s19  ;;  %15 = sbr.rel (!%p13_p9) target bundleno = 4 (0x4), region = 72 }
 0x1ba   :  { %547 = vsyncpa [#allocation3], 1 }
 0x1bb   :  { %549 = vsyncpa [#allocation3 + $0x1], 1 }

</bundles_post_ra>
